<compile_context>
chip_gen: v7x
topology: tpu7x:2x2x1
jax: 0.10.0
libtpu: 0.0.40
codegen_flags: <defaults>
</compile_context>

<pallas_src>
import functools
import math

import jax
import jax.numpy as jnp
from jax.experimental import pallas as pl
from jax.experimental.pallas import tpu as pltpu


def _round_up(x, m):
    return ((x + m - 1) // m) * m


def _pick_tile(padded, cap):
    """Largest multiple of 128 that is <= cap and divides `padded`."""
    t = max(128, (min(cap, padded) // 128) * 128)
    while t > 128 and padded % t != 0:
        t -= 128
    return t


def _chip_config():
    """Per-generation tile caps and VMEM budget (conservative on unknown)."""
    vmem_cap = None
    try:
        vmem_cap = getattr(pltpu.get_tpu_info(), "vmem_capacity_bytes", None)
    except Exception:  # pragma: no cover - detection is best-effort
        pass
    if vmem_cap is None or vmem_cap <= 64 * 1024 * 1024:
        # v7x-class (64 MiB VMEM/TC, 2 TCs/chip) or unknown: conservative.
        return {"tm_cap": 512, "tn_cap": 512, "tk_cap": 512,
                "vmem_limit": 48 * 1024 * 1024, "two_tc": True}
    # v5e / v6e: 128 MiB VMEM, single TensorCore per chip.
    return {"tm_cap": 512, "tn_cap": 512, "tk_cap": 1024,
            "vmem_limit": 64 * 1024 * 1024, "two_tc": False}


# ----------------------------------------------------------------------------
# Kernel: one (tm, tn) f32 output tile, accumulated in-place over the K axis.
# ----------------------------------------------------------------------------
def _linear_kernel(x_ref, w_ref, b_ref, o_ref):
    k = pl.program_id(2)

    @pl.when(k == 0)
    def _init():
        # Fold the bias into the accumulator init; inner K loop is MXU-only.
        o_ref[...] = jnp.broadcast_to(
            b_ref[...].astype(o_ref.dtype), o_ref.shape)

    o_ref[...] += jnp.dot(
        x_ref[...], w_ref[...], preferred_element_type=jnp.float32)


def _pallas_linear(x, w_t, b, *, tm, tn, tk, vmem_limit):
    """x: (M, K), w_t: (K, N), b: (1, N) -> f32 (M, N).

    K and N are already padded to multiples of tk / tn (zero padding, exact).
    M may be ragged: the boundary block is masked by Pallas, so garbage tail
    rows only ever touch output rows >= M, which do not exist.
    """
    M, K = x.shape
    Kw, N = w_t.shape
    assert K == Kw and b.shape == (1, N)
    assert K % tk == 0 and N % tn == 0

    grid_m, grid_n, grid_k = pl.cdiv(M, tm), N // tn, K // tk
    grid = (grid_m, grid_n, grid_k)

    # Deeper pipelining on the streamed operands only when the K loop is long
    # enough for exposed DMA to matter.
    stream_kwargs = {"pipeline_mode": pl.Buffered(3)} if grid_k >= 4 else {}
    x_spec = pl.BlockSpec((tm, tk), lambda i, j, k: (i, k), **stream_kwargs)
    w_spec = pl.BlockSpec((tk, tn), lambda i, j, k: (k, j), **stream_kwargs)
    b_spec = pl.BlockSpec((1, tn), lambda i, j, k: (0, j))

    flops = 2 * (grid_m * tm) * K * N
    bytes_accessed = int(
        grid_n * x.size * x.dtype.itemsize          # x re-read per N column
        + grid_m * w_t.size * w_t.dtype.itemsize    # w re-read per M row
        + b.size * b.dtype.itemsize
        + M * N * 4)                                # f32 output write

    return pl.pallas_call(
        _linear_kernel,
        out_shape=jax.ShapeDtypeStruct((M, N), jnp.float32),
        grid_spec=pltpu.PrefetchScalarGridSpec(
            num_scalar_prefetch=0,
            grid=grid,
            in_specs=[x_spec, w_spec, b_spec],
            out_specs=pl.BlockSpec((tm, tn), lambda i, j, k: (i, j)),
        ),
        compiler_params=pltpu.CompilerParams(
            dimension_semantics=("parallel", "parallel", "arbitrary"),
            vmem_limit_bytes=vmem_limit,
        ),
        cost_estimate=pl.CostEstimate(
            flops=flops, transcendentals=0, bytes_accessed=bytes_accessed),
    )(x, w_t, b)


@functools.partial(
    jax.jit,
    static_argnames=("out_size", "k_pad", "tm", "tn", "tk", "vmem_limit",
                     "compute_dtype"))
def _forward(x, w_t_pad, b_pad, *, out_size, k_pad, tm, tn, tk, vmem_limit,
             compute_dtype):
    B, F = x.shape
    x = x.astype(compute_dtype)
    if F != k_pad:
        # K MUST be zero-padded: garbage in a K-tail block would enter the
        # reduction.  (M-tail garbage is safe: those rows are never stored.)
        x = jnp.pad(x, ((0, 0), (0, k_pad - F)))
    y = _pallas_linear(x, w_t_pad, b_pad, tm=tm, tn=tn, tk=tk,
                       vmem_limit=vmem_limit)
    return y[:, :out_size]


# ----------------------------------------------------------------------------
# Module wrapper.
# ----------------------------------------------------------------------------
class MyMultiLinPallas:
    """JAX/Pallas port of myMultiLin.

    Parameters mimic PyTorch nn.Linear default init:
    U(-1/sqrt(featSize), 1/sqrt(featSize)) for weight and bias.  Weights are
    stored pre-transposed, zero-padded to lane-dense (K_pad, N_pad) slabs and
    pre-cast to `compute_dtype` (bf16 by default for native MXU rate); the
    reference f32 weights/biases are kept for verification.
    """

    def __init__(self, featSize, outputSizes=(1,), key=None,
                 compute_dtype=jnp.bfloat16):
        if key is None:
            key = jax.random.PRNGKey(0)
        self.featSize = featSize
        self.outputSizes = list(outputSizes)
        self.compute_dtype = jax.dtypes.canonicalize_dtype(compute_dtype)
        # Sublane multiple: 8 for f32, 16 for bf16 (packed rows).
        self._sub = 8 * (4 // self.compute_dtype.itemsize)
        self._cfg = _chip_config()

        bound = 1.0 / math.sqrt(featSize)

        # Pad the contraction dim only to the 128-lane requirement, then pick
        # the largest 128-aligned tile (<= per-chip cap) that divides it.
        self.K_pad = _round_up(featSize, 128)
        self.tk = _pick_tile(self.K_pad, self._cfg["tk_cap"])

        self.weights = []    # (O, F)  f32, PyTorch convention (reference)
        self.biases = []     # (O,)    f32
        self._w_t_pad = []   # (K_pad, N_pad)  transposed, padded, compute dtype
        self._b_pad = []     # (1, N_pad)      f32 (folded into f32 accumulator)
        self._tn = []
        self._n_pad = []

        for out_size in self.outputSizes:
            key, kw, kb = jax.random.split(key, 3)
            w = jax.random.uniform(
                kw, (out_size, featSize), jnp.float32, -bound, bound)
            b = jax.random.uniform(
                kb, (out_size,), jnp.float32, -bound, bound)
            self.weights.append(w)
            self.biases.append(b)

            n_pad = _round_up(out_size, 128)
            tn = _pick_tile(n_pad, self._cfg["tn_cap"])

            w_t_pad = jnp.zeros((self.K_pad, n_pad), self.compute_dtype)
            w_t_pad = w_t_pad.at[:featSize, :out_size].set(
                w.T.astype(self.compute_dtype))
            b_pad = jnp.zeros((1, n_pad), jnp.float32)
            b_pad = b_pad.at[0, :out_size].set(b)

            self._w_t_pad.append(w_t_pad)
            self._b_pad.append(b_pad)
            self._tn.append(tn)
            self._n_pad.append(n_pad)

    def _pick_tm(self, B, n_blocks):
        cap = self._cfg["tm_cap"]
        tm = _round_up(B, self._sub) if B <= cap else cap
        m_blocks = -(-B // tm)
        # v7x has 2 TensorCores: make sure the parallel grid axes expose at
        # least 2 blocks when the batch allows it (no effect on v5e/v6e).
        if (self._cfg["two_tc"] and m_blocks * n_blocks < 2
                and B >= 2 * self._sub):
            tm = _round_up(-(-B // 2), self._sub)
        return tm

    def __call__(self, x, taskID=0):
        B, F = x.shape
        assert F == self.featSize
        tn = self._tn[taskID]
        n_pad = self._n_pad[taskID]
        tm = self._pick_tm(B, n_pad // tn)
        return _forward(
            x, self._w_t_pad[taskID], self._b_pad[taskID],
            out_size=self.outputSizes[taskID],
            k_pad=self.K_pad, tm=tm, tn=tn, tk=self.tk,
            vmem_limit=self._cfg["vmem_limit"],
            compute_dtype=self.compute_dtype)


if __name__ == "__main__":
    # Small shapes consistent with the module: batch=8, featSize=32,
    # two task heads with output sizes [4, 8].
    batch = 8
    feat_size = 32
    output_sizes = [4, 8]

    key = jax.random.PRNGKey(0)
    key_x, key_params = jax.random.split(key)
    x = jax.random.normal(key_x, (batch, feat_size), jnp.float32)

    # Default bf16-compute model (native MXU rate, half the weight bytes) and
    # an f32-compute model with identical parameters (exact nn.Linear math).
    model_bf16 = MyMultiLinPallas(feat_size, output_sizes, key=key_params)
    model_f32 = MyMultiLinPallas(feat_size, output_sizes, key=key_params,
                                 compute_dtype=jnp.float32)

    for tid in range(len(output_sizes)):
        ref = x @ model_bf16.weights[tid].T + model_bf16.biases[tid]

        y32 = jax.block_until_ready(model_f32(x, taskID=tid))
        y16 = jax.block_until_ready(model_bf16(x, taskID=tid))

        assert y32.shape == (batch, output_sizes[tid])
        assert y16.shape == (batch, output_sizes[tid])
        assert jnp.allclose(y32, ref, atol=1e-5, rtol=1e-5), "f32 path mismatch"
        assert jnp.allclose(y16, ref, atol=2e-2, rtol=2e-2), "bf16 path mismatch"

    print("KERNEL_OK")
</pallas_src>

<mosaic_0001>
module attributes {stable_mosaic.version = 11 : i64} {
  func.func @_linear_kernel(%arg0: i32, %arg1: i32, %arg2: i32, %arg3: memref<8x128xf32, #tpu.memory_space<vmem>>, %arg4: memref<128x128xf32, #tpu.memory_space<vmem>>, %arg5: memref<1x128xf32, #tpu.memory_space<vmem>>, %arg6: memref<8x128xf32, #tpu.memory_space<vmem>>) attributes {dimension_semantics = [#tpu.dimension_semantics<parallel>, #tpu.dimension_semantics<parallel>, #tpu.dimension_semantics<arbitrary>], iteration_bounds = array<i64: 1, 1, 1>, scalar_prefetch = 0 : i64, scratch_operands = 0 : i64, tpu.core_type = #tpu.core_type<tc>, window_params = [{transform_indices = @transform_0, window_bounds = array<i64: 8, 128>}, {transform_indices = @transform_1, window_bounds = array<i64: 128, 128>}, {transform_indices = @transform_2, window_bounds = array<i64: 1, 128>}, {transform_indices = @transform_3, window_bounds = array<i64: 8, 128>}]} {
    %c0_i32 = arith.constant 0 : i32
    %0 = arith.cmpi eq, %arg2, %c0_i32 : i32
    %1 = arith.extui %0 : i1 to i32
    %c0_i32_0 = arith.constant 0 : i32
    %2 = arith.cmpi ne, %1, %c0_i32_0 : i32
    scf.if %2 {
      %c0_8 = arith.constant 0 : index
      %c0_9 = arith.constant 0 : index
      %9 = vector.load %arg5[%c0_8, %c0_9] : memref<1x128xf32, #tpu.memory_space<vmem>>, vector<1x128xf32>
      %10 = vector.shape_cast %9 : vector<1x128xf32> to vector<1x128xf32>
      %11 = vector.broadcast %10 : vector<1x128xf32> to vector<8x128xf32>
      %c0_10 = arith.constant 0 : index
      %c0_11 = arith.constant 0 : index
      %12 = vector.load %arg6[%c0_10, %c0_11] : memref<8x128xf32, #tpu.memory_space<vmem>>, vector<8x128xf32>
      tpu.vector_store %arg6[%c0_10, %c0_11], %11 {strides = array<i32>} : memref<8x128xf32, #tpu.memory_space<vmem>>, vector<8x128xf32>,
    } else {
    }
    %c0 = arith.constant 0 : index
    %c0_1 = arith.constant 0 : index
    %3 = vector.load %arg6[%c0, %c0_1] : memref<8x128xf32, #tpu.memory_space<vmem>>, vector<8x128xf32>
    %c0_2 = arith.constant 0 : index
    %c0_3 = arith.constant 0 : index
    %4 = vector.load %arg3[%c0_2, %c0_3] : memref<8x128xf32, #tpu.memory_space<vmem>>, vector<8x128xf32>
    %c0_4 = arith.constant 0 : index
    %c0_5 = arith.constant 0 : index
    %5 = vector.load %arg4[%c0_4, %c0_5] : memref<128x128xf32, #tpu.memory_space<vmem>>, vector<128x128xf32>
    %cst = arith.constant dense<0.000000e+00> : vector<8x128xf32>
    %6 = tpu.matmul %4, %5, %cst {dimension_numbers = #tpu.dot_dimension_numbers<[1], [0], [0], [1], [0, 0, 1, 1], [], []>} : vector<8x128xf32>, vector<128x128xf32>, vector<8x128xf32> -> vector<8x128xf32>
    %7 = arith.addf %3, %6 : vector<8x128xf32>
    %c0_6 = arith.constant 0 : index
    %c0_7 = arith.constant 0 : index
    %8 = vector.load %arg6[%c0_6, %c0_7] : memref<8x128xf32, #tpu.memory_space<vmem>>, vector<8x128xf32>
    tpu.vector_store %arg6[%c0_6, %c0_7], %7 {strides = array<i32>} : memref<8x128xf32, #tpu.memory_space<vmem>>, vector<8x128xf32>,
    return
  }
  func.func @transform_0(%arg0: i32, %arg1: i32, %arg2: i32) -> (i32, i32) {
    %c0_i32 = arith.constant 0 : i32
    return %arg0, %arg2 : i32, i32
  }
  func.func @transform_1(%arg0: i32, %arg1: i32, %arg2: i32) -> (i32, i32) {
    %c0_i32 = arith.constant 0 : i32
    return %arg2, %arg1 : i32, i32
  }
  func.func @transform_2(%arg0: i32, %arg1: i32, %arg2: i32) -> (i32, i32) {
    %c0_i32 = arith.constant 0 : i32
    %c0_i32_0 = arith.constant 0 : i32
    return %c0_i32, %arg1 : i32, i32
  }
  func.func @transform_3(%arg0: i32, %arg1: i32, %arg2: i32) -> (i32, i32) {
    %c0_i32 = arith.constant 0 : i32
    return %arg0, %arg1 : i32, i32
  }
}

</mosaic_0001>

<bundles_post_ra>
// kernel: _forward.1
= control target key start
LH: loop header
LB: loop body
LE: loop exit
PB: predicated region body
PF: predicated region fallthrough
CT: control target
= control target key end

     0   :  { %8 = vsyncpa [#allocation3], 0  ;;  %s242_s12 = smov [#allocation2]   ;;  %s289_s0 = inlined_call_operand.vmem [shape: f32[8,128], index: 0, kind: input, shape index: {}]   ;;  %s290_s1 = inlined_call_operand.hbm [shape: f32[128,128], index: 1, kind: input, shape index: {}]   ;;  %s291_s2 = inlined_call_operand.vmem [shape: f32[1,128], index: 2, kind: input, shape index: {}]   ;;  %s292_s3 = inlined_call_operand.vmem [shape: f32[8,128], index: 3, kind: output, shape index: {}]  }
   0x1   :  { %s16_s13 = sshll.u32 %s242_s12, 4  ;;  %s218_s16 = scalar_lea.hbm %s290_s1, 2048  ;;  %s17_s13 = int_to_ptr.vmem [resolvable:$true] %s16_s13 }
   0x2   :  { %p219_p0 = scmp.ne.s32.totalorder %s290_s1, %s218_s16  ;;  %p222_p1 = scmp.lt.u32.totalorder %s218_s16, %s290_s1 }
   0x4   :  { %p224_p2 = pnand %p222_p1, %p219_p0 }
   0x6   :  { %227 = shalt.err (!%p224_p2)
}
   0x7   :  { %s228_s21 = scalar_lea.vmem %s17_s13, 2048  ;;  %p233_p4 = scmp.lt.s32.totalorder %s17_s13, %s17_s13 }
   0x8   :  { %p229_p3 = scmp.ne.s32.totalorder %s17_s13, %s228_s21  ;;  %p234_p5 = scmp.lt.s32.totalorder %s228_s21, %s228_s21 }
   0xa   :  { %p235_p6 = por %p234_p5, %p233_p4 }
   0xc   :  { %p236_p7 = pnand %p235_p6, %p229_p3 }
   0xe   :  { %239 = shalt.err (!%p236_p7)
}
   0xf   :  { %s243_s22 = smov 128   ;;  %s244_s23 = smov 8  }
  0x10   :  { %22 = dma.hbm_to_vmem [thread:$0]  %s290_s1, 2048, %s17_s13, [#allocation3], %s243_s22, %s243_s22, %s244_s23  }
  0x11   :  { %240 = dma.done.wait [#allocation3], 2048  }
  0x12   :  { %241 = vsyncadd [#allocation3], 4294965248  ;;  %v245_v0 = vmov 0.0|0.0   ;;  %vm246_vm0 = vmmov 0   ;;  %v247_v1 = vmov 0.0   ;;  %v42_v2 = vld [vmem:[#allocation2] sm:$0xff] }
  0x13   :  { %188 = vmatprep.subr.bf16.mxu0 %v245_v0  ;;  %185 = vmatprep.mubr.msk.f32.mxu0 %vm246_vm0, %v247_v1  ;;  %v43_v3 = vld [vmem:[#allocation2 + $0x8] sm:$0xff]  ;;  %v44_v4 = vld [vmem:[#allocation2 + $0x10] sm:$0xff]  ;;  %v45_v6 = vld [vmem:[#allocation2 + $0x18] sm:$0xff] }
  0x14   :  { %v189_v5 = vpack.c.bf16 %v43_v3, %v42_v2  ;;  %v192_v7 = vpack.c.bf16 %v45_v6, %v44_v4  ;;  %v46_v8 = vld [vmem:[#allocation2 + $0x20] sm:$0xff]  ;;  %v47_v9 = vld [vmem:[#allocation2 + $0x28] sm:$0xff]  ;;  %v48_v11 = vld [vmem:[#allocation2 + $0x30] sm:$0xff] }
  0x15   :  { %v195_v10 = vpack.c.bf16 %v47_v9, %v46_v8  ;;  %v49_v12 = vld [vmem:[#allocation2 + $0x38] sm:$0xff]  ;;  %v50_v14 = vld [vmem:[#allocation2 + $0x40] sm:$0xff]  ;;  %v51_v15 = vld [vmem:[#allocation2 + $0x48] sm:$0xff] }
  0x16   :  { %190 = vmatpush3.bf16.msra.mxu0 %v189_v5  ;;  %v198_v13 = vpack.c.bf16 %v49_v12, %v48_v11  ;;  %v201_v16 = vpack.c.bf16 %v51_v15, %v50_v14  ;;  %v52_v17 = vld [vmem:[#allocation2 + $0x50] sm:$0xff]  ;;  %v53_v18 = vld [vmem:[#allocation2 + $0x58] sm:$0xff]  ;;  %v54_v20 = vld [vmem:[#allocation2 + $0x60] sm:$0xff] }
  0x17   :  { %191 = vmatprep.subr.bf16.mxu0 %v245_v0  ;;  %v204_v19 = vpack.c.bf16 %v53_v18, %v52_v17  ;;  %v55_v21 = vld [vmem:[#allocation2 + $0x68] sm:$0xff]  ;;  %v56_v23 = vld [vmem:[#allocation2 + $0x70] sm:$0xff]  ;;  %v57_v24 = vld [vmem:[#allocation2 + $0x78] sm:$0xff] }
  0x18   :  { %v207_v22 = vpack.c.bf16 %v55_v21, %v54_v20  ;;  %v210_v25 = vpack.c.bf16 %v57_v24, %v56_v23  ;;  %v41_v26 = vld [vmem:[%s289_s0] sm:$0xff] }
  0x19   :  { %v135_v27 = vld [vmem:[%s291_s2] ss:$0 sm:$0xff] }
  0x1a   :  { %193 = vmatpush3.bf16.msra.mxu0 %v192_v7 }
  0x1b   :  { %194 = vmatprep.subr.bf16.mxu0 %v245_v0 }
  0x1e   :  { %196 = vmatpush3.bf16.msra.mxu0 %v195_v10 }
  0x1f   :  { %197 = vmatprep.subr.bf16.mxu0 %v245_v0 }
  0x22   :  { %199 = vmatpush3.bf16.msra.mxu0 %v198_v13 }
  0x23   :  { %200 = vmatprep.subr.bf16.mxu0 %v245_v0 }
  0x26   :  { %202 = vmatpush3.bf16.msra.mxu0 %v201_v16 }
  0x27   :  { %203 = vmatprep.subr.bf16.mxu0 %v245_v0 }
  0x2a   :  { %205 = vmatpush3.bf16.msra.mxu0 %v204_v19 }
  0x2b   :  { %206 = vmatprep.subr.bf16.mxu0 %v245_v0 }
  0x2e   :  { %208 = vmatpush3.bf16.msra.mxu0 %v207_v22 }
  0x2f   :  { %209 = vmatprep.subr.bf16.mxu0 %v245_v0 }
  0x32   :  { %211 = vmatpush3.bf16.msra.mxu0 %v210_v25 }
  0x35   :  { %186 = vmatmul.mubr.f32.vlgmr.msra.gmra.mrb[0].mxu0 %v41_v26 }
 0x108   :  { %v124_v28 = vpop.f32.mrb[0].mxu0 }
 0x109   :  { %v128_v29 = vadd.f32 %v135_v27, %v124_v28  ;;  %v187_v30 = vpop.f32.mrb[1].mxu0 }
 0x10b   :  { %129 = vst [vmem:[%s292_s3] sm:$0xff] %v128_v29 }
 0x10c   :  { %134 = vsyncpa [#allocation3], 1 }

</bundles_post_ra>
